<compile_context>
chip_gen: v6e
topology: v6e:2x2x1
jax: 0.10.0
libtpu: 0.0.40
codegen_flags: <defaults>
</compile_context>

<pallas_src>
import functools

import jax
import jax.numpy as jnp
from jax.experimental import pallas as pl
from jax.experimental.pallas import tpu as pltpu


# ----------------------------------------------------------------------------
# helpers
# ----------------------------------------------------------------------------
def _round_up(x, m):
    return (x + m - 1) // m * m


def _device_kind():
    try:
        return jax.devices()[0].device_kind.lower()
    except Exception:  # pragma: no cover - defensive
        return ""


def _is_pre_v6(dk):
    return any(t in dk for t in ("v2", "v3", "v4", "v5"))


def _vmem_limit_bytes(dk):
    # v5e/v6e: 128 MiB VMEM per core; v7x: 64 MiB/TC.  Leave headroom.
    if ("v5" in dk) or ("v6" in dk):
        return 100 << 20
    return 56 << 20  # safe for v7x and unknown chips


def _spec(shape, index_map, *, single_buffer=False):
    """BlockSpec; constant-index (weight) blocks get a single VMEM buffer."""
    if single_buffer:
        try:
            return pl.BlockSpec(shape, index_map, pipeline_mode=pl.Buffered(1))
        except Exception:  # older jax without pipeline_mode / Buffered
            return pl.BlockSpec(shape, index_map)
    return pl.BlockSpec(shape, index_map)


def _exp_f32(x, bf16_exp):
    # bf16 EUP path (~2x rate on v6e/v7x); sum/log stay f32.
    if bf16_exp:
        return jnp.exp(x.astype(jnp.bfloat16)).astype(jnp.float32)
    return jnp.exp(x)


def _hidden(emb_ref, w1_ref, b1_ref):
    # fc1 (MXU, f32 accumulate) + bias + ReLU.  Dropout (eval mode) == identity.
    h = jnp.dot(emb_ref[...], w1_ref[...], preferred_element_type=jnp.float32)
    return jnp.maximum(h + b1_ref[...], 0.0)


# ----------------------------------------------------------------------------
# kernels
# ----------------------------------------------------------------------------
def _ffnn_fused_kernel(emb_ref, w1_ref, b1_ref, w2_ref, b2_ref, out_ref, *,
                       bf16_exp):
    """Whole vocab resident per grid step; exact in-tile log_softmax."""
    h = _hidden(emb_ref, w1_ref, b1_ref)
    logits = jnp.dot(h.astype(w2_ref.dtype), w2_ref[...],
                     preferred_element_type=jnp.float32) + b2_ref[...]
    m = jnp.max(logits, axis=-1, keepdims=True)
    shifted = logits - m
    lse = jnp.log(jnp.sum(_exp_f32(shifted, bf16_exp), axis=-1, keepdims=True))
    out_ref[...] = (shifted - lse).astype(out_ref.dtype)


def _ffnn_lse_kernel(emb_ref, w1_ref, b1_ref, w2_ref, b2_ref, lse_ref,
                     h_sc, m_sc, l_sc, *, bf16_exp):
    """Pass 1 of the vocab-tiled path: streaming (online) logsumexp over V."""
    v = pl.program_id(1)

    @pl.when(v == 0)
    def _():
        h_sc[...] = _hidden(emb_ref, w1_ref, b1_ref).astype(h_sc.dtype)
        m_sc[...] = jnp.full_like(m_sc, -jnp.inf)
        l_sc[...] = jnp.zeros_like(l_sc)

    logits = jnp.dot(h_sc[...], w2_ref[...],
                     preferred_element_type=jnp.float32) + b2_ref[...]
    m_new = jnp.maximum(m_sc[...], jnp.max(logits, axis=-1, keepdims=True))
    alpha = jnp.exp(m_sc[...] - m_new)
    p_sum = jnp.sum(_exp_f32(logits - m_new, bf16_exp), axis=-1, keepdims=True)
    l_sc[...] = alpha * l_sc[...] + p_sum
    m_sc[...] = m_new

    @pl.when(v == pl.num_programs(1) - 1)
    def _():
        lse_ref[...] = m_sc[...] + jnp.log(l_sc[...])


def _ffnn_writeout_kernel(emb_ref, w1_ref, b1_ref, w2_ref, b2_ref, lse_ref,
                          out_ref, h_sc):
    """Pass 2 of the vocab-tiled path: recompute logits tile, write log-probs."""
    @pl.when(pl.program_id(1) == 0)
    def _():
        h_sc[...] = _hidden(emb_ref, w1_ref, b1_ref).astype(h_sc.dtype)

    logits = jnp.dot(h_sc[...], w2_ref[...],
                     preferred_element_type=jnp.float32) + b2_ref[...]
    out_ref[...] = (logits - lse_ref[...]).astype(out_ref.dtype)


# ----------------------------------------------------------------------------
# wrapper
# ----------------------------------------------------------------------------
def prepare_ffnn_params(emb_table, w1, b1, w2, b2, *, use_bf16=True,
                        lane_mult=128):
    """Pad + cast the FFNN parameters once (store them padded, reuse per call).

    w1: [ngram*d_model, d_hidden], b1: [1, d_hidden] (or [d_hidden])
    w2: [d_hidden, vocab],         b2: [1, vocab]    (or [vocab])
    Linear weights are pre-transposed to [in, out] so the kernel does x @ W + b.
    """
    K, H = w1.shape
    H2, V = w2.shape
    assert H2 == H
    cd = jnp.bfloat16 if use_bf16 else jnp.float32
    K_pad = _round_up(K, lane_mult)
    H_pad = _round_up(H, lane_mult)
    V_pad = _round_up(V, lane_mult)

    w1_p = jnp.zeros((K_pad, H_pad), cd).at[:K, :H].set(w1.astype(cd))
    b1_p = jnp.zeros((1, H_pad), jnp.float32).at[:, :H].set(
        jnp.reshape(b1, (1, H)).astype(jnp.float32))
    w2_p = jnp.zeros((H_pad, V_pad), cd).at[:H, :V].set(w2.astype(cd))
    # padded vocab columns get bias -1e9 -> exp underflows to 0 -> exact lse.
    b2_p = jnp.full((1, V_pad), -1e9, jnp.float32).at[:, :V].set(
        jnp.reshape(b2, (1, V)).astype(jnp.float32))

    return dict(emb_table=emb_table.astype(cd), w1=w1_p, b1=b1_p, w2=w2_p,
                b2=b2_p, K=K, H=H, V=V, compute_dtype=cd)


def ffnn_forward(src, params, *, tile_b=None, tile_v=None, vocab_tiling=None,
                 out_dtype=jnp.float32, bf16_exp=None):
    """src: [B, ngram] int32 token ids -> [B, vocab] log-probs (out_dtype)."""
    emb_table = params["emb_table"]
    w1, b1, w2, b2 = params["w1"], params["b1"], params["w2"], params["b2"]
    K, H, V = params["K"], params["H"], params["V"]
    cd = params["compute_dtype"]
    K_pad, H_pad = w1.shape
    V_pad = w2.shape[1]
    d_model = emb_table.shape[1]
    B, ngram = src.shape
    assert ngram * d_model == K

    dk = _device_kind()
    vmem_limit = _vmem_limit_bytes(dk)
    pre_v6 = _is_pre_v6(dk)
    if bf16_exp is None:
        # bf16 EUP exists on v6e/v7x only; keep f32 exp on v5 and older.
        bf16_exp = (cd == jnp.bfloat16) and not pre_v6

    # --- batch tiling: per-generation default, clamped to the real batch, and
    #     kept a multiple of the native sublane packing (16 bf16 / 8 f32). ----
    pack = 16 if cd == jnp.bfloat16 else 8
    if tile_b is None:
        tile_b = 128 if pre_v6 else 256
    tile_b = max(pack, _round_up(min(tile_b, _round_up(B, pack)), pack))
    B_pad = _round_up(B, tile_b)
    # v7x megacore: make the batch grid non-degenerate when possible.
    if "v7" in dk and (B_pad // tile_b) < 2 and tile_b > pack:
        tile_b = max(pack, _round_up(tile_b // 2, pack))
        B_pad = _round_up(B, tile_b)
    nb = B_pad // tile_b

    cbytes = jnp.dtype(cd).itemsize
    obytes = jnp.dtype(out_dtype).itemsize

    # --- path selection: keep the whole vocab resident only if it fits VMEM.
    if vocab_tiling is None:
        need = (2 * tile_b * K_pad * cbytes              # emb (double-buffered)
                + K_pad * H_pad * cbytes + H_pad * 4     # w1 + b1 (single buf)
                + H_pad * V_pad * cbytes + V_pad * 4     # w2 + b2 (single buf)
                + 2 * tile_b * V_pad * obytes            # out (double-buffered)
                + tile_b * V_pad * 4                     # f32 logits temp
                + tile_b * H_pad * 4)                    # f32 hidden temp
        vocab_tiling = need > 0.6 * vmem_limit

    # --- embedding lookup + flatten (plain JAX glue; fused gather is a TODO),
    #     then pad only the activations per call. ----------------------------
    embeds = jnp.take(emb_table, src, axis=0).reshape(B, K)
    emb_p = jnp.pad(embeds, ((0, B_pad - B), (0, K_pad - K)))

    if not vocab_tiling:
        out = pl.pallas_call(
            functools.partial(_ffnn_fused_kernel, bf16_exp=bf16_exp),
            out_shape=jax.ShapeDtypeStruct((B_pad, V_pad), out_dtype),
            grid=(nb,),
            in_specs=[
                pl.BlockSpec((tile_b, K_pad), lambda i: (i, 0)),
                _spec((K_pad, H_pad), lambda i: (0, 0), single_buffer=True),
                _spec((1, H_pad), lambda i: (0, 0), single_buffer=True),
                _spec((H_pad, V_pad), lambda i: (0, 0), single_buffer=True),
                _spec((1, V_pad), lambda i: (0, 0), single_buffer=True),
            ],
            out_specs=pl.BlockSpec((tile_b, V_pad), lambda i: (i, 0)),
            compiler_params=pltpu.CompilerParams(
                dimension_semantics=("parallel",),
                vmem_limit_bytes=vmem_limit),
        )(emb_p, w1, b1, w2, b2)
        return out[:B, :V]

    # ------------------------- vocab-tiled, two-pass ------------------------
    if tile_v is None:
        tile_v = 512 if V_pad >= 512 else V_pad
    tile_v = min(_round_up(tile_v, 128), V_pad)
    if V_pad % tile_v != 0:
        tile_v = 128  # always divides V_pad (a multiple of 128)
    nv = V_pad // tile_v

    cparams = pltpu.CompilerParams(
        dimension_semantics=("parallel", "arbitrary"),  # vocab axis last
        vmem_limit_bytes=vmem_limit)

    # Pass 1: per-row logsumexp (online) while streaming w2 vocab tiles.
    lse = pl.pallas_call(
        functools.partial(_ffnn_lse_kernel, bf16_exp=bf16_exp),
        out_shape=jax.ShapeDtypeStruct((B_pad, 1), jnp.float32),
        grid=(nb, nv),
        in_specs=[
            pl.BlockSpec((tile_b, K_pad), lambda b, v: (b, 0)),
            _spec((K_pad, H_pad), lambda b, v: (0, 0), single_buffer=True),
            _spec((1, H_pad), lambda b, v: (0, 0), single_buffer=True),
            pl.BlockSpec((H_pad, tile_v), lambda b, v: (0, v)),
            pl.BlockSpec((1, tile_v), lambda b, v: (0, v)),
        ],
        out_specs=pl.BlockSpec((tile_b, 1), lambda b, v: (b, 0)),
        scratch_shapes=[
            pltpu.VMEM((tile_b, H_pad), cd),        # cached hidden activations
            pltpu.VMEM((tile_b, 1), jnp.float32),   # running max
            pltpu.VMEM((tile_b, 1), jnp.float32),   # running sum(exp)
        ],
        compiler_params=cparams,
    )(emb_p, w1, b1, w2, b2)

    # Pass 2: recompute logits per vocab tile and write normalized log-probs.
    out = pl.pallas_call(
        _ffnn_writeout_kernel,
        out_shape=jax.ShapeDtypeStruct((B_pad, V_pad), out_dtype),
        grid=(nb, nv),
        in_specs=[
            pl.BlockSpec((tile_b, K_pad), lambda b, v: (b, 0)),
            _spec((K_pad, H_pad), lambda b, v: (0, 0), single_buffer=True),
            _spec((1, H_pad), lambda b, v: (0, 0), single_buffer=True),
            pl.BlockSpec((H_pad, tile_v), lambda b, v: (0, v)),
            pl.BlockSpec((1, tile_v), lambda b, v: (0, v)),
            pl.BlockSpec((tile_b, 1), lambda b, v: (b, 0)),
        ],
        out_specs=pl.BlockSpec((tile_b, tile_v), lambda b, v: (b, v)),
        scratch_shapes=[pltpu.VMEM((tile_b, H_pad), cd)],
        compiler_params=cparams,
    )(emb_p, w1, b1, w2, b2, lse)
    return out[:B, :V]


# ----------------------------------------------------------------------------
# demo / self-check
# ----------------------------------------------------------------------------
def _reference_logprobs(src, emb_table_f32, w1, b1, w2, b2, *, bf16):
    B = src.shape[0]
    K = w1.shape[0]
    embeds = jnp.take(emb_table_f32, src, axis=0).reshape(B, K)
    if bf16:
        h = jnp.maximum(
            jnp.dot(embeds.astype(jnp.bfloat16), w1.astype(jnp.bfloat16),
                    preferred_element_type=jnp.float32) + b1, 0.0)
        logits = jnp.dot(h.astype(jnp.bfloat16), w2.astype(jnp.bfloat16),
                         preferred_element_type=jnp.float32) + b2
    else:
        h = jnp.maximum(embeds @ w1 + b1, 0.0)
        logits = h @ w2 + b2
    return jax.nn.log_softmax(logits, axis=-1)


if __name__ == "__main__":
    # Small config consistent with the module; vocab=300 (padded to 384) also
    # exercises the multi-tile vocab path.
    vocab_size = 300
    d_model = 32
    d_hidden = 64
    ngram_size = 3
    B = 40

    key = jax.random.PRNGKey(0)
    k_emb, k_w1, k_w2, k_b2, k_src = jax.random.split(key, 5)

    weight_range = 0.1
    # input_embedding.weight ~ U(-0.1, 0.1)
    emb_table = jax.random.uniform(
        k_emb, (vocab_size, d_model), jnp.float32, -weight_range, weight_range)
    # fc1.weight ~ U(-0.1, 0.1) stored transposed [in, out]; fc1.bias = 0
    w1 = jax.random.uniform(
        k_w1, (ngram_size * d_model, d_hidden), jnp.float32,
        -weight_range, weight_range)
    b1 = jnp.zeros((1, d_hidden), jnp.float32)
    # output_embedding: default nn.Linear init, U(-1/sqrt(in), 1/sqrt(in))
    bound = 1.0 / (d_hidden ** 0.5)
    w2 = jax.random.uniform(k_w2, (d_hidden, vocab_size), jnp.float32,
                            -bound, bound)
    b2 = jax.random.uniform(k_b2, (1, vocab_size), jnp.float32, -bound, bound)
    src = jax.random.randint(k_src, (B, ngram_size), 0, vocab_size, jnp.int32)

    # Pad/cast the parameters once (reused across calls).
    params = prepare_ffnn_params(emb_table, w1, b1, w2, b2, use_bf16=True)

    # Path 1: whole vocab resident per grid step (auto-selected at this size).
    lp_fused = jax.block_until_ready(ffnn_forward(src, params,
                                                  vocab_tiling=False))
    # Path 2: vocab-tiled two-pass log_softmax (the large-vocab path).
    lp_tiled = jax.block_until_ready(ffnn_forward(src, params,
                                                  vocab_tiling=True,
                                                  tile_v=128))

    assert lp_fused.shape == (B, vocab_size)
    assert lp_tiled.shape == (B, vocab_size)

    ref_bf16 = _reference_logprobs(src, emb_table, w1, b1, w2, b2, bf16=True)
    ref_f32 = _reference_logprobs(src, emb_table, w1, b1, w2, b2, bf16=False)

    for name, lp in (("fused", lp_fused), ("vocab-tiled", lp_tiled)):
        assert jnp.allclose(lp, ref_bf16, atol=1e-2), f"{name}: vs bf16 ref"
        assert jnp.allclose(lp, ref_f32, atol=3e-2), f"{name}: vs f32 ref"
        # log-probs should (approximately) normalize to 1
        assert jnp.allclose(jnp.sum(jnp.exp(lp), axis=-1), 1.0, atol=1e-2), name
    assert jnp.allclose(lp_fused, lp_tiled, atol=5e-3), "paths disagree"

    print("KERNEL_OK")
</pallas_src>

<mosaic_0001>
module attributes {stable_mosaic.version = 11 : i64} {
  func.func @_ffnn_fused_kernel(%arg0: i32, %arg1: memref<48x128xbf16, #tpu.memory_space<vmem>>, %arg2: memref<128x128xbf16, #tpu.memory_space<vmem>>, %arg3: memref<1x128xf32, #tpu.memory_space<vmem>>, %arg4: memref<128x384xbf16, #tpu.memory_space<vmem>>, %arg5: memref<1x384xf32, #tpu.memory_space<vmem>>, %arg6: memref<48x384xf32, #tpu.memory_space<vmem>>) attributes {dimension_semantics = [#tpu.dimension_semantics<parallel>], iteration_bounds = array<i64: 1>, scalar_prefetch = 0 : i64, scratch_operands = 0 : i64, tpu.core_type = #tpu.core_type<tc>, window_params = [{transform_indices = @transform_0, window_bounds = array<i64: 48, 128>}, {pipeline_mode = #tpu.pipeline_mode<synchronous>, transform_indices = @transform_1, window_bounds = array<i64: 128, 128>}, {pipeline_mode = #tpu.pipeline_mode<synchronous>, transform_indices = @transform_2, window_bounds = array<i64: 1, 128>}, {pipeline_mode = #tpu.pipeline_mode<synchronous>, transform_indices = @transform_3, window_bounds = array<i64: 128, 384>}, {pipeline_mode = #tpu.pipeline_mode<synchronous>, transform_indices = @transform_4, window_bounds = array<i64: 1, 384>}, {transform_indices = @transform_5, window_bounds = array<i64: 48, 384>}]} {
    %c0 = arith.constant 0 : index
    %c0_0 = arith.constant 0 : index
    %0 = vector.load %arg1[%c0, %c0_0] : memref<48x128xbf16, #tpu.memory_space<vmem>>, vector<48x128xbf16>
    %c0_1 = arith.constant 0 : index
    %c0_2 = arith.constant 0 : index
    %1 = vector.load %arg2[%c0_1, %c0_2] : memref<128x128xbf16, #tpu.memory_space<vmem>>, vector<128x128xbf16>
    %cst = arith.constant dense<0.000000e+00> : vector<48x128xf32>
    %2 = tpu.matmul %0, %1, %cst {dimension_numbers = #tpu.dot_dimension_numbers<[1], [0], [0], [1], [0, 0, 1, 1], [], []>} : vector<48x128xbf16>, vector<128x128xbf16>, vector<48x128xf32> -> vector<48x128xf32>
    %c0_3 = arith.constant 0 : index
    %c0_4 = arith.constant 0 : index
    %3 = vector.load %arg3[%c0_3, %c0_4] : memref<1x128xf32, #tpu.memory_space<vmem>>, vector<1x128xf32>
    %4 = vector.broadcast %3 : vector<1x128xf32> to vector<48x128xf32>
    %5 = arith.addf %2, %4 : vector<48x128xf32>
    %cst_5 = arith.constant 0.000000e+00 : f32
    %6 = vector.broadcast %cst_5 : f32 to vector<48x128xf32>
    %7 = arith.maximumf %5, %6 : vector<48x128xf32>
    %8 = arith.truncf %7 : vector<48x128xf32> to vector<48x128xbf16>
    %c0_6 = arith.constant 0 : index
    %c0_7 = arith.constant 0 : index
    %9 = vector.load %arg4[%c0_6, %c0_7] : memref<128x384xbf16, #tpu.memory_space<vmem>>, vector<128x384xbf16>
    %cst_8 = arith.constant dense<0.000000e+00> : vector<48x384xf32>
    %10 = tpu.matmul %8, %9, %cst_8 {dimension_numbers = #tpu.dot_dimension_numbers<[1], [0], [0], [1], [0, 0, 1, 1], [], []>} : vector<48x128xbf16>, vector<128x384xbf16>, vector<48x384xf32> -> vector<48x384xf32>
    %c0_9 = arith.constant 0 : index
    %c0_10 = arith.constant 0 : index
    %11 = vector.load %arg5[%c0_9, %c0_10] : memref<1x384xf32, #tpu.memory_space<vmem>>, vector<1x384xf32>
    %12 = vector.broadcast %11 : vector<1x384xf32> to vector<48x384xf32>
    %13 = arith.addf %10, %12 : vector<48x384xf32>
    %cst_11 = arith.constant dense<0xFF800000> : vector<48xf32>
    %14 = vector.multi_reduction <maximumf>, %13, %cst_11 [1] : vector<48x384xf32> to vector<48xf32>
    %15 = vector.shape_cast %14 : vector<48xf32> to vector<48x1xf32>
    %16 = vector.broadcast %15 : vector<48x1xf32> to vector<48x384xf32>
    %17 = arith.subf %13, %16 : vector<48x384xf32>
    %18 = arith.truncf %17 : vector<48x384xf32> to vector<48x384xbf16>
    %19 = math.exp %18 : vector<48x384xbf16>
    %20 = arith.extf %19 : vector<48x384xbf16> to vector<48x384xf32>
    %cst_12 = arith.constant dense<0.000000e+00> : vector<48xf32>
    %21 = vector.multi_reduction <add>, %20, %cst_12 [1] : vector<48x384xf32> to vector<48xf32>
    %22 = vector.shape_cast %21 : vector<48xf32> to vector<48x1xf32>
    %23 = math.log %22 : vector<48x1xf32>
    %24 = vector.broadcast %23 : vector<48x1xf32> to vector<48x384xf32>
    %25 = arith.subf %17, %24 : vector<48x384xf32>
    %c0_13 = arith.constant 0 : index
    %c0_14 = arith.constant 0 : index
    %26 = vector.load %arg6[%c0_13, %c0_14] : memref<48x384xf32, #tpu.memory_space<vmem>>, vector<48x384xf32>
    tpu.vector_store %arg6[%c0_13, %c0_14], %25 {strides = array<i32>} : memref<48x384xf32, #tpu.memory_space<vmem>>, vector<48x384xf32>,
    return
  }
  func.func @transform_0(%arg0: i32) -> (i32, i32) {
    %c0_i32 = arith.constant 0 : i32
    %c0_i32_0 = arith.constant 0 : i32
    return %arg0, %c0_i32 : i32, i32
  }
  func.func @transform_1(%arg0: i32) -> (i32, i32) {
    %c0_i32 = arith.constant 0 : i32
    %c0_i32_0 = arith.constant 0 : i32
    %c0_i32_1 = arith.constant 0 : i32
    return %c0_i32, %c0_i32_0 : i32, i32
  }
  func.func @transform_2(%arg0: i32) -> (i32, i32) {
    %c0_i32 = arith.constant 0 : i32
    %c0_i32_0 = arith.constant 0 : i32
    %c0_i32_1 = arith.constant 0 : i32
    return %c0_i32, %c0_i32_0 : i32, i32
  }
  func.func @transform_3(%arg0: i32) -> (i32, i32) {
    %c0_i32 = arith.constant 0 : i32
    %c0_i32_0 = arith.constant 0 : i32
    %c0_i32_1 = arith.constant 0 : i32
    return %c0_i32, %c0_i32_0 : i32, i32
  }
  func.func @transform_4(%arg0: i32) -> (i32, i32) {
    %c0_i32 = arith.constant 0 : i32
    %c0_i32_0 = arith.constant 0 : i32
    %c0_i32_1 = arith.constant 0 : i32
    return %c0_i32, %c0_i32_0 : i32, i32
  }
  func.func @transform_5(%arg0: i32) -> (i32, i32) {
    %c0_i32 = arith.constant 0 : i32
    %c0_i32_0 = arith.constant 0 : i32
    return %arg0, %c0_i32 : i32, i32
  }
}

</mosaic_0001>

<bundles_post_ra>
// kernel: tpu_custom_call.1
= control target key start
LH: loop header
LB: loop body
LE: loop exit
PB: predicated region body
PF: predicated region fallthrough
CT: control target
= control target key end

     0   :  { %10 = vsyncpa [#allocation3], 0  ;;  %s1226_s0 = inlined_call_operand.hbm [shape: bf16[48,128], index: 0, kind: input, shape index: {}]   ;;  %s1227_s1 = inlined_call_operand.hbm [shape: bf16[128,128], index: 1, kind: input, shape index: {}]   ;;  %s1228_s2 = inlined_call_operand.vmem [shape: f32[1,128], index: 2, kind: input, shape index: {}]   ;;  %s1229_s3 = inlined_call_operand.hbm [shape: bf16[128,384], index: 3, kind: input, shape index: {}]   ;;  %s1230_s4 = inlined_call_operand.vmem [shape: f32[1,384], index: 4, kind: input, shape index: {}]   ;;  %s1231_s5 = inlined_call_operand.hbm [shape: f32[48,384], index: 5, kind: output, shape index: {}]  }
   0x1   :  { %11 = vsyncpa [#allocation6], 0 }
   0x2   :  { %12 = vsyncpa [#allocation4], 0  ;;  %s1009_s18 = smov [#allocation5]   ;;  %s1010_s20 = smov [#allocation2]  }
   0x3   :  { %s30_s19 = sshll.u32 %s1009_s18, 4  ;;  %s18_s21 = sshll.u32 %s1010_s20, 4  ;;  %s31_s19 = int_to_ptr.vmem [resolvable:$true] %s30_s19  ;;  %s19_s21 = int_to_ptr.vmem [resolvable:$true] %s18_s21 }
   0x4   :  { %s931_s22 = scalar_lea.vmem %s31_s19, 1024  ;;  %p936_p1 = scmp.lt.s32.totalorder %s31_s19, %s31_s19 }
   0x5   :  { %p932_p0 = scmp.ne.s32.totalorder %s31_s19, %s931_s22  ;;  %p937_p2 = scmp.lt.s32.totalorder %s931_s22, %s931_s22 }
   0x7   :  { %p938_p3 = por %p937_p2, %p936_p1 }
   0x9   :  { %p939_p4 = pnand %p938_p3, %p932_p0 }
   0xb   :  { %942 = shalt.err (!%p939_p4)
}
   0xc   :  { %s1011_s23 = smov 64   ;;  %s1012_s24 = smov 4  }
   0xd   :  { %36 = dma.hbm_to_vmem [thread:$0]  %s1227_s1, 1024, %s31_s19, [#allocation6], %s1011_s23, %s1011_s23, %s1012_s24  }
   0xe   :  { %s951_s27 = scalar_lea.vmem %s19_s21, 384  ;;  %p956_p6 = scmp.lt.s32.totalorder %s19_s21, %s19_s21 }
   0xf   :  { %p952_p5 = scmp.ne.s32.totalorder %s19_s21, %s951_s27  ;;  %p957_p7 = scmp.lt.s32.totalorder %s951_s27, %s951_s27 }
  0x11   :  { %p958_p8 = por %p957_p7, %p956_p6 }
  0x13   :  { %p959_p9 = pnand %p958_p8, %p952_p5 }
  0x15   :  { %962 = shalt.err (!%p959_p9)
}
  0x16   :  { %24 = dma.hbm_to_vmem [thread:$0]  %s1226_s0, 384, %s19_s21, [#allocation3], %s1011_s23, %s1011_s23, %s1012_s24  }
  0x17   :  { %s1013_s30 = smov [#allocation7]  }
  0x18   :  { %s44_s6 = sshll.u32 %s1013_s30, 4  ;;  %s45_s6 = int_to_ptr.vmem [resolvable:$true] %s44_s6 }
  0x19   :  { %s971_s7 = scalar_lea.vmem %s45_s6, 3072  ;;  %p976_p11 = scmp.lt.s32.totalorder %s45_s6, %s45_s6 }
  0x1a   :  { %p972_p10 = scmp.ne.s32.totalorder %s45_s6, %s971_s7  ;;  %p977_p12 = scmp.lt.s32.totalorder %s971_s7, %s971_s7 }
  0x1c   :  { %p978_p13 = por %p977_p12, %p976_p11 }
  0x1e   :  { %p979_p0 = pnand %p978_p13, %p972_p10 }
  0x20   :  { %982 = shalt.err (!%p979_p0)
}
  0x21   :  { %s1014_s1 = smov 192   ;;  %s1015_s8 = smov 12  }
  0x22   :  { %50 = dma.hbm_to_vmem [thread:$0]  %s1229_s3, 3072, %s45_s6, [#allocation6], %s1014_s1, %s1014_s1, %s1015_s8  }
  0x23   :  { %1003 = dma.done.wait [#allocation3], 384  }
  0x24   :  { %1004 = vsyncadd [#allocation3], 4294966912 }
  0x25   :  { %1005 = dma.done.wait [#allocation6], 4096  }
  0x26   :  { %1006 = vsyncadd [#allocation6], 4294963200  ;;  %v1016_v0 = vmov 0.0   ;;  %vm1017_vm0 = vmmov 0   ;;  %v850_v1 = vld [vmem:[#allocation5 + $0x38] sm:$0xff]   ;;  %v851_v2 = vld [vmem:[#allocation5 + $0x30] sm:$0xff]  }
  0x27   :  { %765 = vmatprep.subr.bf16.mxu0 %v1016_v0  ;;  %781 = vmatprep.mubr.msk.bf16.mxu0 %vm1017_vm0, %v1016_v0  ;;  %v852_v3 = vld [vmem:[#allocation5 + $0x28] sm:$0xff]   ;;  %v853_v4 = vld [vmem:[#allocation5 + $0x20] sm:$0xff]   ;;  %v854_v7 = vld [vmem:[#allocation5 + $0x18] sm:$0xff]   ;;  %v1018_v36 = vmov 0  }
  0x28   :  { %766 = vmatpush3.bf16.msra.mxu0 %v850_v1  ;;  %v861_v5 = vld [vmem:[#allocation7 + $0xac] ss:$12 sps:$4 sm:$0xff]   ;;  %v863_v6 = vld [vmem:[#allocation7 + $0xa8] ss:$12 sps:$4 sm:$0xff]   ;;  %v867_v9 = vld [vmem:[#allocation7 + $0x90] ss:$12 sps:$4 sm:$0xff]   ;;  %433 = vmatprep.mubr.bf16.mxu1 %v1018_v36 }
  0x29   :  { %767 = vmatprep.subr.bf16.mxu0 %v1016_v0  ;;  %401 = vmatprep.subr.bf16.mxu1 %v861_v5  ;;  %v865_v8 = vld [vmem:[#allocation7 + $0x94] ss:$12 sps:$4 sm:$0xff]   ;;  %v869_v10 = vld [vmem:[#allocation7 + $0x7c] ss:$12 sps:$4 sm:$0xff]   ;;  %v871_v12 = vld [vmem:[#allocation7 + $0x78] ss:$12 sps:$4 sm:$0xff]  }
  0x2a   :  { %402 = vmatpush1.bf16.msra.mxu1 %v863_v6  ;;  %v855_v11 = vld [vmem:[#allocation5 + $0x10] sm:$0xff]   ;;  %v856_v14 = vld [vmem:[#allocation5 + $0x8] sm:$0xff]   ;;  %v857_v17 = vld [vmem:[#allocation5] sm:$0xff]  }
  0x2b   :  { %403 = vmatprep.subr.bf16.mxu1 %v865_v8  ;;  %v873_v13 = vld [vmem:[#allocation7 + $0x64] ss:$12 sps:$4 sm:$0xff]   ;;  %v875_v15 = vld [vmem:[#allocation7 + $0x60] ss:$12 sps:$4 sm:$0xff]   ;;  %v879_v18 = vld [vmem:[#allocation7 + $0x48] ss:$12 sps:$4 sm:$0xff]  }
  0x2c   :  { %768 = vmatpush3.bf16.msra.mxu0 %v851_v2  ;;  %v877_v16 = vld [vmem:[#allocation7 + $0x4c] ss:$12 sps:$4 sm:$0xff]   ;;  %v881_v19 = vld [vmem:[#allocation7 + $0x34] ss:$12 sps:$4 sm:$0xff]   ;;  %v864_v21 = vld [vmem:[#allocation7 + $0xb0] ss:$12 sps:$4 sm:$0xff]   ;;  %v258_v2 = vlaneseq }
  0x2d   :  { %769 = vmatprep.subr.bf16.mxu0 %v1016_v0  ;;  %v858_v20 = vld [vmem:[#allocation2] sm:$0xff]   ;;  %v883_v22 = vld [vmem:[#allocation7 + $0x30] ss:$12 sps:$4 sm:$0xff]   ;;  %v868_v23 = vld [vmem:[#allocation7 + $0x98] ss:$12 sps:$4 sm:$0xff]  }
  0x2e   :  { %404 = vmatpush1.bf16.msra.mxu1 %v867_v9  ;;  %v859_v24 = vld [vmem:[#allocation2 + $0x8] sm:$0xff]   ;;  %v1075_v25 = vld [vmem:[#allocation7 + $0x80] ss:$12 sps:$4 sm:$0xff]   ;;  %v860_v27 = vld [vmem:[#allocation2 + $0x10] sm:$0xff]  }
  0x2f   :  { %405 = vmatprep.subr.bf16.mxu1 %v869_v10  ;;  %v1081_v26 = vld [vmem:[#allocation7 + $0x68] ss:$12 sps:$4 sm:$0xff]   ;;  %v1085_v28 = vld [vmem:[#allocation7 + $0x50] ss:$12 sps:$4 sm:$0xff]   ;;  %v1092_v29 = vld [vmem:[#allocation7 + $0x38] ss:$12 sps:$4 sm:$0xff]  }
  0x30   :  { %770 = vmatpush3.bf16.msra.mxu0 %v852_v3  ;;  %v885_v30 = vld [vmem:[#allocation7 + $0x1c] ss:$12 sps:$4 sm:$0xff]   ;;  %v887_v31 = vld [vmem:[#allocation7 + $0x18] ss:$12 sps:$4 sm:$0xff]   ;;  %v888_v32 = vld [vmem:[#allocation7 + $0x20] ss:$12 sps:$4 sm:$0xff]  }
  0x31   :  { %771 = vmatprep.subr.bf16.mxu0 %v1016_v0  ;;  %v889_v33 = vld [vmem:[#allocation7 + $0x4] ss:$12 sps:$4 sm:$0xff]   ;;  %v891_v34 = vld [vmem:[#allocation7] ss:$12 sps:$4 sm:$0xff]   ;;  %v892_v35 = vld [vmem:[#allocation7 + $0x8] ss:$12 sps:$4 sm:$0xff]  }
  0x32   :  { %406 = vmatpush1.bf16.msra.mxu1 %v871_v12  ;;  %v707_v37 = vld [vmem:[%s1228_s2] ss:$0 sm:$0xff]  ;;  %v259_v3 = vshrl.u32 %v258_v2, 7 }
  0x33   :  { %407 = vmatprep.subr.bf16.mxu1 %v873_v13  ;;  %v256_v6 = vld [vmem:[%s1230_s4] sm:$0x7]  ;;  %s1019_s4 = smov [#allocation8]  }
  0x34   :  { %772 = vmatpush3.bf16.msra.mxu0 %v853_v4  ;;  %v260_v4 = vsub.s32 0, %v259_v3  ;;  %v264_v5 = vsub.s32 1, %v259_v3  ;;  %s694_s12 = sshll.u32 %s1019_s4, 4  ;;  %s695_s12 = int_to_ptr.vmem [resolvable:$true] %s694_s12 }
  0x35   :  { %773 = vmatprep.subr.bf16.mxu0 %v1016_v0  ;;  %s983_s13 = scalar_lea.vmem %s695_s12, 2304  ;;  %p988_p2 = scmp.lt.s32.totalorder %s695_s12, %s695_s12 }
  0x36   :  { %408 = vmatpush1.bf16.msra.mxu1 %v875_v15  ;;  %v261_v8 = vrot.slane %v256_v6, %v260_v4  ;;  %v265_v9 = vrot.slane %v256_v6, %v264_v5  ;;  %p984_p1 = scmp.ne.s32.totalorder %s695_s12, %s983_s13  ;;  %p989_p3 = scmp.lt.s32.totalorder %s983_s13, %s983_s13 }
  0x37   :  { %409 = vmatprep.subr.bf16.mxu1 %v877_v16 }
  0x38   :  { %774 = vmatpush3.bf16.msra.mxu0 %v854_v7  ;;  %v268_v7 = vsub.s32 2, %v259_v3  ;;  %p990_p4 = por %p989_p3, %p988_p2 }
  0x39   :  { %775 = vmatprep.subr.bf16.mxu0 %v1016_v0 }
  0x3a   :  { %410 = vmatpush1.bf16.msra.mxu1 %v879_v18  ;;  %v269_v12 = vrot.slane %v256_v6, %v268_v7  ;;  %p991_p5 = pnand %p990_p4, %p984_p1 }
  0x3b   :  { %411 = vmatprep.subr.bf16.mxu1 %v881_v19 }
  0x3c   :  { %776 = vmatpush3.bf16.msra.mxu0 %v855_v11 }
  0x3d   :  { %777 = vmatprep.subr.bf16.mxu0 %v1016_v0 }
  0x3e   :  { %412 = vmatpush1.bf16.msra.mxu1 %v883_v22 }
  0x3f   :  { %413 = vmatprep.subr.bf16.mxu1 %v885_v30 }
  0x40   :  { %778 = vmatpush3.bf16.msra.mxu0 %v856_v14 }
  0x41   :  { %779 = vmatprep.subr.bf16.mxu0 %v1016_v0 }
  0x42   :  { %414 = vmatpush1.bf16.msra.mxu1 %v887_v31 }
  0x43   :  { %415 = vmatprep.subr.bf16.mxu1 %v889_v33 }
  0x44   :  { %780 = vmatpush3.bf16.msra.mxu0 %v857_v17 }
  0x45   :  { %793 = vmatprep.subr.bf16.mxu0 %v1016_v0 }
  0x46   :  { %416 = vmatpush1.bf16.msra.mxu1 %v891_v34 }
  0x47   :  { %782 = vmatmul.mubr.bf16.vlgmr.msra.gmra.mxu0 %v858_v20  ;;  %821 = vmatprep.subr.bf16.mxu1 %v1016_v0 }
  0x48   :  { %785 = vmatprep.mubr.msk.bf16.mxu0 %vm1017_vm0, %v1016_v0  ;;  %794 = vmatpush3.bf16.msra.mxu0 %v864_v21 }
  0x49   :  { %795 = vmatprep.subr.bf16.mxu0 %v1016_v0 }
  0x4c   :  { %796 = vmatpush3.bf16.msra.mxu0 %v868_v23 }
  0x4d   :  { %797 = vmatprep.subr.bf16.mxu0 %v1016_v0 }
  0x4f   :  { %786 = vmatmul.mubr.bf16.gmra.mxu0 %v859_v24 }
  0x50   :  { %789 = vmatprep.mubr.msk.bf16.mxu0 %vm1017_vm0, %v1016_v0  ;;  %798 = vmatpush3.bf16.msra.mxu0 %v1075_v25 }
  0x51   :  { %799 = vmatprep.subr.bf16.mxu0 %v1016_v0 }
  0x54   :  { %800 = vmatpush3.bf16.msra.mxu0 %v1081_v26 }
  0x55   :  { %801 = vmatprep.subr.bf16.mxu0 %v1016_v0 }
  0x57   :  { %790 = vmatmul.mubr.bf16.gmra.mxu0 %v860_v27 }
  0x58   :  { %802 = vmatpush3.bf16.msra.mxu0 %v1085_v28  ;;  %809 = vmatprep.mubr.msk.bf16.mxu0 %vm1017_vm0, %v1016_v0 }
  0x59   :  { %803 = vmatprep.subr.bf16.mxu0 %v1016_v0 }
  0x5c   :  { %804 = vmatpush3.bf16.msra.mxu0 %v1092_v29 }
  0x5d   :  { %805 = vmatprep.subr.bf16.mxu0 %v1016_v0 }
  0x60   :  { %806 = vmatpush3.bf16.msra.mxu0 %v888_v32 }
  0x61   :  { %807 = vmatprep.subr.bf16.mxu0 %v1016_v0 }
  0x64   :  { %808 = vmatpush3.bf16.msra.mxu0 %v892_v35 }
 0x107   :  { %v192_v38 = vpop.f32.mrf.mxu0 }
 0x108   :  { %v193_v40 = vadd.f32 %v707_v37, %v192_v38 }
 0x109   :  { %v783_v39 = vpop.f32.mrf.mxu0 }
 0x10a   :  { %v215_v44 = vmax.f32 %v193_v40, 0.0 }
 0x10b   :  { %v195_v41 = vpop.f32.mrf.mxu0 }
 0x10c   :  { %v196_v42 = vadd.f32 %v707_v37, %v195_v41 }
 0x10d   :  { %v784_v43 = vpop.f32.mrf.mxu0 }
 0x10e   :  { %v216_v45 = vmax.f32 %v196_v42, 0.0 }
 0x10f   :  { %v200_v46 = vpop.f32.mrf.mxu0 }
 0x110   :  { %v221_v47 = vpack.c.bf16 %v216_v45, %v215_v44  ;;  %v201_v48 = vadd.f32 %v707_v37, %v200_v46 }
 0x111   :  { %v787_v49 = vpop.f32.mrf.mxu0 }
 0x112   :  { %434 = vmatmul.mubr.bf16.vlgmr.msra.gmra.mxu1 %v221_v47  ;;  %810 = vmatmul.mubr.bf16.vlgmr.msra.gmra.mxu0 %v221_v47  ;;  %v217_v51 = vmax.f32 %v201_v48, 0.0 }
 0x113   :  { %829 = vmatpush3.bf16.msra.mxu1 %v864_v21  ;;  %v203_v50 = vpop.f32.mrf.mxu0  ;;  %443 = vmatprep.mubr.bf16.mxu1 %v1018_v36 }
 0x114   :  { %v204_v52 = vadd.f32 %v707_v37, %v203_v50  ;;  %822 = vmatprep.subr.bf16.mxu1 %v1016_v0 }
 0x115   :  { %v788_v53 = vpop.f32.mrf.mxu0 }
 0x116   :  { %v218_v54 = vmax.f32 %v204_v52, 0.0 }
 0x117   :  { %830 = vmatpush3.bf16.msra.mxu1 %v868_v23  ;;  %v208_v55 = vpop.f32.mrf.mxu0 }
 0x118   :  { %v222_v56 = vpack.c.bf16 %v218_v54, %v217_v51  ;;  %v209_v57 = vadd.f32 %v707_v37, %v208_v55  ;;  %823 = vmatprep.subr.bf16.mxu1 %v1016_v0 }
 0x119   :  { %v791_v58 = vpop.f32.mrf.mxu0 }
 0x11a   :  { %444 = vmatmul.mubr.bf16.gmra.mxu1 %v222_v56  ;;  %v219_v60 = vmax.f32 %v209_v57, 0.0 }
 0x11b   :  { %831 = vmatpush3.bf16.msra.mxu1 %v1075_v25  ;;  %v211_v59 = vpop.f32.mrf.mxu0  ;;  %453 = vmatprep.mubr.bf16.mxu1 %v1018_v36 }
 0x11c   :  { %v212_v61 = vadd.f32 %v707_v37, %v211_v59  ;;  %824 = vmatprep.subr.bf16.mxu1 %v1016_v0 }
 0x11d   :  { %v792_v62 = vpop.f32.mrf.mxu0 }
 0x11e   :  { %v220_v63 = vmax.f32 %v212_v61, 0.0 }
 0x11f   :  { %832 = vmatpush3.bf16.msra.mxu1 %v1081_v26 }
 0x120   :  { %v223_v1 = vpack.c.bf16 %v220_v63, %v219_v60  ;;  %825 = vmatprep.subr.bf16.mxu1 %v1016_v0 }
 0x122   :  { %454 = vmatmul.mubr.bf16.gmra.mxu1 %v223_v1 }
 0x123   :  { %833 = vmatpush3.bf16.msra.mxu1 %v1085_v28  ;;  %813 = vmatprep.mubr.msk.bf16.mxu1 %vm1017_vm0, %v1016_v0 }
 0x124   :  { %826 = vmatprep.subr.bf16.mxu1 %v1016_v0 }
 0x127   :  { %834 = vmatpush3.bf16.msra.mxu1 %v1092_v29 }
 0x128   :  { %827 = vmatprep.subr.bf16.mxu1 %v1016_v0 }
 0x12b   :  { %835 = vmatpush3.bf16.msra.mxu1 %v888_v32 }
 0x12c   :  { %828 = vmatprep.subr.bf16.mxu1 %v1016_v0 }
 0x12f   :  { %836 = vmatpush3.bf16.msra.mxu1 %v892_v35 }
 0x132   :  { %814 = vmatmul.mubr.bf16.vlgmr.msra.gmra.mxu1 %v222_v56 }
 0x133   :  { %817 = vmatprep.mubr.msk.bf16.mxu1 %vm1017_vm0, %v1016_v0 }
 0x13a   :  { %818 = vmatmul.mubr.bf16.gmra.mxu1 %v223_v1 }
 0x1d2   :  { %v435_v10 = vpop.f32.mrf.mxu1  ;;  %v498_v11 = vpop.f32.mrf.mxu0 }
 0x1d3   :  { %v436_v15 = vadd.f32 %v435_v10, %v261_v8  ;;  %v499_v18 = vadd.f32 %v498_v11, %v269_v12 }
 0x1d4   :  { %v437_v13 = vpop.f32.mrf.mxu1  ;;  %v811_v14 = vpop.f32.mrf.mxu0 }
 0x1d5   :  { %v438_v16 = vadd.f32 %v437_v13, %v265_v9 }
 0x1d6   :  { %v439_v0 = vpop.f32.mrf.mxu1  ;;  %v501_v17 = vpop.f32.mrf.mxu0 }
 0x1d7   :  { %v521_v19 = vmax.f32 %v436_v15, %v438_v16  ;;  %v440_v22 = vadd.f32 %v439_v0, %v261_v8  ;;  %v502_v26 = vadd.f32 %v501_v17, %v269_v12 }
 0x1d8   :  { %v441_v20 = vpop.f32.mrf.mxu1  ;;  %v812_v21 = vpop.f32.mrf.mxu0 }
 0x1d9   :  { %v442_v23 = vadd.f32 %v441_v20, %v265_v9  ;;  %v522_v24 = vmax.f32 %v521_v19, %v499_v18 }
 0x1da   :  { %v445_v25 = vpop.f32.mrf.mxu1 }
 0x1db   :  { %v525_v27 = vmax.f32 %v440_v22, %v442_v23  ;;  %523 = vmax.xlane.f32.xlu0 %v522_v24  ;;  %v1119_v35 = vadd.f32 %v445_v25, %v261_v8 }
 0x1dc   :  { %v447_v28 = vpop.f32.mrf.mxu1 }
 0x1dd   :  { %v526_v29 = vmax.f32 %v525_v27, %v502_v26  ;;  %v1121_v36 = vadd.f32 %v447_v28, %v265_v9 }
 0x1de   :  { %v449_v30 = vpop.f32.mrf.mxu1 }
 0x1df   :  { %527 = vmax.xlane.f32.xlu0 %v526_v29  ;;  %v529_v41 = vmax.f32 %v1119_v35, %v1121_v36  ;;  %v450_v43 = vadd.f32 %v449_v30, %v261_v8 }
 0x1e0   :  { %v451_v31 = vpop.f32.mrf.mxu1 }
 0x1e1   :  { %v1123_v39 = vadd.f32 %v451_v31, %v265_v9 }
 0x1e2   :  { %v455_v32 = vpop.f32.mrf.mxu1 }
 0x1e3   :  { %v533_v46 = vmax.f32 %v450_v43, %v1123_v39  ;;  %v1128_v47 = vadd.f32 %v455_v32, %v261_v8 }
 0x1e4   :  { %v457_v33 = vpop.f32.mrf.mxu1 }
 0x1e5   :  { %v1130_v48 = vadd.f32 %v457_v33, %v265_v9 }
 0x1e6   :  { %v459_v34 = vpop.f32.mrf.mxu1 }
 0x1e7   :  { %v537_v53 = vmax.f32 %v1128_v47, %v1130_v48  ;;  %v1138_v57 = vadd.f32 %v459_v34, %v261_v8 }
 0x1e8   :  { %v461_v37 = vpop.f32.mrf.mxu1 }
 0x1e9   :  { %v1134_v54 = vadd.f32 %v461_v37, %v265_v9 }
 0x1eb   :  { %v541_v60 = vmax.f32 %v1138_v57, %v1134_v54 }
 0x1f2   :  { %v506_v38 = vpop.f32.mrf.mxu1 }
 0x1f3   :  { %v507_v40 = vadd.f32 %v506_v38, %v269_v12 }
 0x1f4   :  { %v815_v42 = vpop.f32.mrf.mxu1 }
 0x1f5   :  { %v530_v44 = vmax.f32 %v529_v41, %v507_v40 }
 0x1f6   :  { %v509_v45 = vpop.f32.mrf.mxu1 }
 0x1f7   :  { %v510_v49 = vadd.f32 %v509_v45, %v269_v12  ;;  %531 = vmax.xlane.f32.xlu1 %v530_v44 }
 0x1f8   :  { %v816_v50 = vpop.f32.mrf.mxu1 }
 0x1f9   :  { %v534_v51 = vmax.f32 %v533_v46, %v510_v49 }
 0x1fa   :  { %v514_v52 = vpop.f32.mrf.mxu1 }
 0x1fb   :  { %v1136_v55 = vadd.f32 %v514_v52, %v269_v12  ;;  %535 = vmax.xlane.f32.xlu1 %v534_v51 }
 0x1fc   :  { %v819_v56 = vpop.f32.mrf.mxu1 }
 0x1fd   :  { %v538_v58 = vmax.f32 %v537_v53, %v1136_v55 }
 0x1fe   :  { %v517_v59 = vpop.f32.mrf.mxu1 }
 0x1ff   :  { %v518_v61 = vadd.f32 %v517_v59, %v269_v12  ;;  %539 = vmax.xlane.f32.xlu0 %v538_v58 }
 0x200   :  { %v820_v62 = vpop.f32.mrf.mxu1 }
 0x201   :  { %v542_v63 = vmax.f32 %v541_v60, %v518_v61 }
 0x203   :  { %543 = vmax.xlane.f32.xlu1 %v542_v63 }
 0x264   :  { %v524_v1 = vpop.xlane.xlu0 %523 }
 0x265   :  { %v1143_v2 = vsub.f32 %v436_v15, %v524_v1  ;;  %v1145_v3 = vsub.f32 %v438_v16, %v524_v1  ;;  %v1147_v5 = vsub.f32 %v499_v18, %v524_v1 }
 0x268   :  { %v528_v4 = vpop.xlane.xlu0 %527 }
 0x269   :  { %v1149_v6 = vsub.f32 %v440_v22, %v528_v4  ;;  %v1151_v7 = vsub.f32 %v442_v23, %v528_v4  ;;  %v1153_v8 = vsub.f32 %v502_v26, %v528_v4 }
 0x26b   :  { %v563_v9 = vpack.c.bf16 %v1149_v6, %v1143_v2  ;;  %v564_v10 = vpack.c.bf16 %v1151_v7, %v1145_v3  ;;  %v565_v11 = vpack.c.bf16 %v1153_v8, %v1147_v5 }
 0x26d   :  { %v573_v12 = vmul.bf16 1069105081, %v563_v9  ;;  %v576_v13 = vmul.bf16 1069105081, %v564_v10  ;;  %v579_v14 = vmul.bf16 1069105081, %v565_v11 }
 0x26f   :  { %893 = vpow.bf16 %v573_v12 }
 0x270   :  { %895 = vpow.bf16 %v576_v13 }
 0x271   :  { %897 = vpow.bf16 %v579_v14 }
 0x27d   :  { %v894_v15 = vpop.eup %893 }
 0x27e   :  { %v896_v16 = vpop.eup %895  ;;  %v602_v0 = vunpack.c.h.bf16 %v894_v15  ;;  %v599_v17 = vunpack.c.l.bf16 %v894_v15 }
 0x27f   :  { %v898_v18 = vpop.eup %897  ;;  %v603_v19 = vunpack.c.h.bf16 %v896_v16  ;;  %v600_v20 = vunpack.c.l.bf16 %v896_v16 }
 0x280   :  { %v532_v21 = vpop.xlane.xlu1 %531  ;;  %v604_v22 = vunpack.c.h.bf16 %v898_v18  ;;  %v601_v24 = vunpack.c.l.bf16 %v898_v18 }
 0x281   :  { %v621_v23 = vadd.f32 %v603_v19, %v602_v0  ;;  %v617_v25 = vadd.f32 %v600_v20, %v599_v17  ;;  %v1162_v27 = vsub.f32 %v1119_v35, %v532_v21  ;;  %v1165_v28 = vsub.f32 %v1121_v36, %v532_v21 }
 0x282   :  { %v1167_v31 = vsub.f32 %v507_v40, %v532_v21 }
 0x283   :  { %v622_v26 = vadd.f32 %v621_v23, %v604_v22  ;;  %v618_v30 = vadd.f32 %v617_v25, %v601_v24 }
 0x284   :  { %v536_v29 = vpop.xlane.xlu1 %535 }
 0x285   :  { %v1169_v32 = vsub.f32 %v450_v43, %v536_v29  ;;  %v1172_v33 = vsub.f32 %v1123_v39, %v536_v29  ;;  %v1174_v34 = vsub.f32 %v510_v49, %v536_v29  ;;  %623 = vadd.xlane.f32.xlu1 %v622_v26  ;;  %619 = vadd.xlane.f32.xlu0 %v618_v30 }
 0x287   :  { %v566_v35 = vpack.c.bf16 %v1169_v32, %v1162_v27  ;;  %v567_v36 = vpack.c.bf16 %v1172_v33, %v1165_v28  ;;  %v568_v37 = vpack.c.bf16 %v1174_v34, %v1167_v31 }
 0x288   :  { %v540_v42 = vpop.xlane.xlu0 %539 }
 0x289   :  { %v582_v38 = vmul.bf16 1069105081, %v566_v35  ;;  %v585_v40 = vmul.bf16 1069105081, %v567_v36  ;;  %v588_v41 = vmul.bf16 1069105081, %v568_v37  ;;  %v1183_v39 = vsub.f32 %v1128_v47, %v540_v42 }
 0x28a   :  { %v1186_v43 = vsub.f32 %v1130_v48, %v540_v42  ;;  %v1189_v44 = vsub.f32 %v1136_v55, %v540_v42 }
 0x28b   :  { %899 = vpow.bf16 %v582_v38 }
 0x28c   :  { %901 = vpow.bf16 %v585_v40  ;;  %v544_v45 = vpop.xlane.xlu1 %543 }
 0x28d   :  { %903 = vpow.bf16 %v588_v41  ;;  %v1192_v46 = vsub.f32 %v1138_v57, %v544_v45  ;;  %v1195_v49 = vsub.f32 %v1134_v54, %v544_v45  ;;  %v1197_v50 = vsub.f32 %v518_v61, %v544_v45 }
 0x28f   :  { %v569_v47 = vpack.c.bf16 %v1192_v46, %v1183_v39  ;;  %v570_v48 = vpack.c.bf16 %v1195_v49, %v1186_v43  ;;  %v571_v51 = vpack.c.bf16 %v1197_v50, %v1189_v44 }
 0x291   :  { %v591_v52 = vmul.bf16 1069105081, %v569_v47  ;;  %v594_v53 = vmul.bf16 1069105081, %v570_v48  ;;  %v597_v55 = vmul.bf16 1069105081, %v571_v51 }
 0x293   :  { %905 = vpow.bf16 %v591_v52 }
 0x294   :  { %907 = vpow.bf16 %v594_v53 }
 0x295   :  { %909 = vpow.bf16 %v597_v55 }
 0x299   :  { %v900_v56 = vpop.eup %899 }
 0x29a   :  { %v902_v54 = vpop.eup %901  ;;  %v608_v57 = vunpack.c.h.bf16 %v900_v56  ;;  %v605_v58 = vunpack.c.l.bf16 %v900_v56 }
 0x29b   :  { %v904_v59 = vpop.eup %903  ;;  %v609_v60 = vunpack.c.h.bf16 %v902_v54  ;;  %v606_v61 = vunpack.c.l.bf16 %v902_v54 }
 0x29c   :  { %v610_v62 = vunpack.c.h.bf16 %v904_v59  ;;  %v607_v1 = vunpack.c.l.bf16 %v904_v59 }
 0x29d   :  { %v629_v63 = vadd.f32 %v609_v60, %v608_v57  ;;  %v625_v4 = vadd.f32 %v606_v61, %v605_v58 }
 0x29f   :  { %v630_v9 = vadd.f32 %v629_v63, %v610_v62  ;;  %v626_v10 = vadd.f32 %v625_v4, %v607_v1 }
 0x2a1   :  { %v906_v11 = vpop.eup %905  ;;  %631 = vadd.xlane.f32.xlu1 %v630_v9  ;;  %627 = vadd.xlane.f32.xlu0 %v626_v10 }
 0x2a2   :  { %v908_v12 = vpop.eup %907  ;;  %v614_v13 = vunpack.c.h.bf16 %v906_v11  ;;  %v611_v14 = vunpack.c.l.bf16 %v906_v11 }
 0x2a3   :  { %v910_v15 = vpop.eup %909  ;;  %v615_v16 = vunpack.c.h.bf16 %v908_v12  ;;  %v612_v0 = vunpack.c.l.bf16 %v908_v12 }
 0x2a4   :  { %v616_v17 = vunpack.c.h.bf16 %v910_v15  ;;  %v613_v19 = vunpack.c.l.bf16 %v910_v15 }
 0x2a5   :  { %v637_v18 = vadd.f32 %v615_v16, %v614_v13  ;;  %v633_v20 = vadd.f32 %v612_v0, %v611_v14 }
 0x2a7   :  { %v638_v21 = vadd.f32 %v637_v18, %v616_v17  ;;  %v634_v22 = vadd.f32 %v633_v20, %v613_v19 }
 0x2a9   :  { %639 = vadd.xlane.f32.xlu1 %v638_v21  ;;  %635 = vadd.xlane.f32.xlu0 %v634_v22 }
 0x30e   :  { %v624_v23 = vpop.xlane.xlu1 %623  ;;  %v620_v24 = vpop.xlane.xlu0 %619 }
 0x30f   :  { %911 = vlog2.f32 %v624_v23 }
 0x310   :  { %913 = vlog2.f32 %v620_v24 }
 0x31c   :  { %v912_v25 = vpop.eup %911 }
 0x31d   :  { %v914_v26 = vpop.eup %913  ;;  %v644_v29 = vmul.f32 0.6931472, %v912_v25 }
 0x31e   :  { %v642_v30 = vmul.f32 0.6931472, %v914_v26 }
 0x31f   :  { %v656_v35 = vsub.f32 %v1149_v6, %v644_v29  ;;  %v657_v36 = vsub.f32 %v1151_v7, %v644_v29  ;;  %v658_v37 = vsub.f32 %v1153_v8, %v644_v29 }
 0x320   :  { %v653_v38 = vsub.f32 %v1143_v2, %v642_v30  ;;  %v654_v40 = vsub.f32 %v1145_v3, %v642_v30  ;;  %v655_v41 = vsub.f32 %v1147_v5, %v642_v30 }
 0x321   :  { %674 = vst [vmem:[#allocation8 + $0x18] sm:$0xff] %v656_v35  ;;  %675 = vst [vmem:[#allocation8 + $0x20] sm:$0xff] %v657_v36 }
 0x322   :  { %676 = vst [vmem:[#allocation8 + $0x28] sm:$0xff] %v658_v37  ;;  %671 = vst [vmem:[#allocation8] sm:$0xff] %v653_v38 }
 0x323   :  { %672 = vst [vmem:[#allocation8 + $0x8] sm:$0xff] %v654_v40  ;;  %673 = vst [vmem:[#allocation8 + $0x10] sm:$0xff] %v655_v41 }
 0x32a   :  { %v632_v42 = vpop.xlane.xlu1 %631  ;;  %v628_v45 = vpop.xlane.xlu0 %627 }
 0x32b   :  { %915 = vlog2.f32 %v632_v42 }
 0x32c   :  { %917 = vlog2.f32 %v628_v45 }
 0x332   :  { %v640_v6 = vpop.xlane.xlu1 %639  ;;  %v636_v7 = vpop.xlane.xlu0 %635 }
 0x333   :  { %919 = vlog2.f32 %v640_v6 }
 0x334   :  { %921 = vlog2.f32 %v636_v7 }
 0x338   :  { %v916_v8 = vpop.eup %915 }
 0x339   :  { %v918_v2 = vpop.eup %917  ;;  %v648_v47 = vmul.f32 0.6931472, %v916_v8 }
 0x33a   :  { %v646_v3 = vmul.f32 0.6931472, %v918_v2 }
 0x33b   :  { %v662_v5 = vsub.f32 %v1169_v32, %v648_v47  ;;  %v663_v48 = vsub.f32 %v1172_v33, %v648_v47  ;;  %v664_v51 = vsub.f32 %v1174_v34, %v648_v47 }
 0x33c   :  { %v659_v52 = vsub.f32 %v1162_v27, %v646_v3  ;;  %v660_v53 = vsub.f32 %v1165_v28, %v646_v3  ;;  %v661_v55 = vsub.f32 %v1167_v31, %v646_v3 }
 0x33d   :  { %680 = vst [vmem:[#allocation8 + $0x48] sm:$0xff] %v662_v5  ;;  %681 = vst [vmem:[#allocation8 + $0x50] sm:$0xff] %v663_v48 }
 0x33e   :  { %682 = vst [vmem:[#allocation8 + $0x58] sm:$0xff] %v664_v51  ;;  %677 = vst [vmem:[#allocation8 + $0x30] sm:$0xff] %v659_v52 }
 0x33f   :  { %678 = vst [vmem:[#allocation8 + $0x38] sm:$0xff] %v660_v53  ;;  %679 = vst [vmem:[#allocation8 + $0x40] sm:$0xff] %v661_v55 }
 0x340   :  { %v920_v56 = vpop.eup %919 }
 0x341   :  { %v922_v32 = vpop.eup %921  ;;  %v652_v54 = vmul.f32 0.6931472, %v920_v56 }
 0x342   :  { %v650_v33 = vmul.f32 0.6931472, %v922_v32 }
 0x343   :  { %v668_v34 = vsub.f32 %v1192_v46, %v652_v54  ;;  %v669_v27 = vsub.f32 %v1195_v49, %v652_v54  ;;  %v670_v28 = vsub.f32 %v1197_v50, %v652_v54 }
 0x344   :  { %v665_v31 = vsub.f32 %v1183_v39, %v650_v33  ;;  %v666_v57 = vsub.f32 %v1186_v43, %v650_v33  ;;  %v667_v58 = vsub.f32 %v1189_v44, %v650_v33 }
 0x345   :  { %686 = vst [vmem:[#allocation8 + $0x78] sm:$0xff] %v668_v34  ;;  %687 = vst [vmem:[#allocation8 + $0x80] sm:$0xff] %v669_v27 }
 0x346   :  { %688 = vst [vmem:[#allocation8 + $0x88] sm:$0xff] %v670_v28  ;;  %683 = vst [vmem:[#allocation8 + $0x60] sm:$0xff] %v665_v31 }
 0x347   :  { %684 = vst [vmem:[#allocation8 + $0x68] sm:$0xff] %v666_v57  ;;  %685 = vst [vmem:[#allocation8 + $0x70] sm:$0xff] %v667_v58 }
 0x348   :  { %994 = shalt.err (!%p991_p5)
}
 0x349   :  { %s1020_s14 = smov 384   ;;  %s1021_s15 = smov 24  }
 0x34a   :  { %700 = dma.vmem_to_hbm [thread:$0]  %s695_s12, 2304, %s1231_s5, [#allocation4], %s1020_s14, %s1020_s14, %s1021_s15  }
 0x34b   :  { %1007 = dma.done.wait [#allocation4], 2304  }
 0x34c   :  { %1008 = vsyncadd [#allocation4], 4294964992 }
 0x34d   :  { %704 = vsyncpa [#allocation3], 1 }
 0x34e   :  { %705 = vsyncpa [#allocation6], 1 }
 0x34f   :  { %706 = vsyncpa [#allocation4], 1 }

</bundles_post_ra>
